<compile_context>
chip_gen: v7x
topology: tpu7x:2x2x1
jax: 0.10.0
libtpu: 0.0.40
codegen_flags: <defaults>
</compile_context>

<pallas_src>
import math

import jax
import jax.numpy as jnp
from jax.experimental import pallas as pl
from jax.experimental.pallas import tpu as pltpu

# Small, shape-consistent config (hidden must be divisible by num_heads).
HIDDEN = 32
NUM_HEADS = 4
HEAD_DIM = HIDDEN // NUM_HEADS
LN_EPS = 1e-12
MASK_NEG = -1e9  # finite large-negative mask (HF-BERT style); exp() underflows to 0


def cross_attn_kernel(x_ref, c_ref, mask_ref, hsel_ref,
                      wq_ref, bq_ref, wk_ref, bk_ref, wv_ref, bv_ref,
                      wo_ref, bo_ref, gamma_ref, beta_ref,
                      out_ref):
    """Fused: QKV projections, all-head scaled dot-product attention with additive
    block-diagonal/padding mask, softmax, output dense, residual add, LayerNorm.

    x_ref:  [TQ, H]  query rows (also the residual input)
    c_ref:  [Mk, H]  all context rows (Mk = B*Sk)
    mask_ref: [TQ, Mk] additive mask (0 where attending is allowed, -1e9 otherwise)
    hsel_ref: [NH, 1, H] per-head one-hot lane selector
    """
    x_in = x_ref[...]                              # keep native dtype for MXU operands
    c_in = c_ref[...]
    hsel = hsel_ref[...]                           # [NH, 1, H], f32
    add_mask = mask_ref[...]                       # [TQ, Mk], f32

    # Q/K/V projections: single [rows, H] @ [H, H] MXU matmuls (f32 accumulation).
    q = jnp.dot(x_in, wq_ref[...], preferred_element_type=jnp.float32) + bq_ref[...]
    k = jnp.dot(c_in, wk_ref[...], preferred_element_type=jnp.float32) + bk_ref[...]
    v = jnp.dot(c_in, wv_ref[...], preferred_element_type=jnp.float32) + bv_ref[...]

    # Head split via lane masking: qh[h] keeps only head-h feature lanes of q, so
    # contracting over the full H axis yields exactly the per-head scores.
    qh = q[None, :, :] * hsel                                      # [NH, TQ, H]
    kb = jnp.broadcast_to(k[None, :, :], (NUM_HEADS,) + k.shape)   # [NH, Mk, H]
    scale = 1.0 / math.sqrt(HEAD_DIM)
    scores = jnp.einsum("hqd,hkd->hqk", qh, kb,
                        preferred_element_type=jnp.float32) * scale  # [NH, TQ, Mk]
    scores = scores + add_mask[None, :, :]

    # Softmax over keys (EUP exp + approx reciprocal; VALU stays free of divides).
    m = jnp.max(scores, axis=-1, keepdims=True)
    e = jnp.exp(scores - m)
    p = e * pl.reciprocal(jnp.sum(e, axis=-1, keepdims=True), approx=True)

    # Per-head context: mask V's lanes per head; heads land in disjoint lanes of the
    # result, so summing over the head axis reproduces the concatenated context
    # layer in the same feature order as the PyTorch .permute().view().
    vh = v[None, :, :] * hsel                                      # [NH, Mk, H]
    ctx_h = jnp.einsum("hqk,hkd->hqd", p, vh,
                       preferred_element_type=jnp.float32)         # [NH, TQ, H]
    attn = jnp.sum(ctx_h, axis=0)                                  # [TQ, H]

    # BertAttentionOutput: dense -> (dropout: identity) -> residual -> LayerNorm.
    o = jnp.dot(attn, wo_ref[...], preferred_element_type=jnp.float32) + bo_ref[...]
    y = o + x_in.astype(jnp.float32)
    mean = jnp.mean(y, axis=-1, keepdims=True)
    var = jnp.mean((y - mean) ** 2, axis=-1, keepdims=True)        # biased var (PyTorch LN)
    yhat = (y - mean) * jax.lax.rsqrt(var + LN_EPS)
    out_ref[...] = (yhat * gamma_ref[...] + beta_ref[...]).astype(out_ref.dtype)


def bert_cross_attention(x, ctx, ctx_att_mask, params, *, num_q_tiles=1):
    """x: [B, Sq, H], ctx: [B, Sk, H], ctx_att_mask: [B, Sk] with 0/1 entries.

    num_q_tiles: number of query-row tiles (grid steps).  Use 1 on v5e/v6e
    (single TensorCore, minimizes per-step overhead); use 2 on v7x so both
    TensorCores get a "parallel" grid step.
    """
    B, Sq, H = x.shape
    _, Sk, _ = ctx.shape
    assert H == HIDDEN
    M, Mk = B * Sq, B * Sk
    assert M % num_q_tiles == 0
    TQ = M // num_q_tiles
    assert TQ == M or TQ % 8 == 0, "query row tile must be 8-aligned"

    # Fold batch into the row dimension.
    x2 = x.reshape(M, H)
    c2 = ctx.reshape(Mk, H)

    # Additive mask [M, Mk]: allowed iff same batch AND key not padded.
    # Finite -1e9 (not -inf): exp underflows to exactly 0 for allowed-row softmax,
    # matching the PyTorch module, and avoids NaN on fully masked rows.
    q_batch = jnp.repeat(jnp.arange(B, dtype=jnp.int32), Sq)       # [M]
    k_batch = jnp.repeat(jnp.arange(B, dtype=jnp.int32), Sk)       # [Mk]
    same_batch = q_batch[:, None] == k_batch[None, :]
    key_valid = ctx_att_mask.reshape(Mk) != 0
    add_mask = jnp.where(same_batch & key_valid[None, :],
                         jnp.float32(0.0), jnp.float32(MASK_NEG))  # [M, Mk]

    # Per-head one-hot lane selector: head_sel[h, 0, d] = 1 iff d // HEAD_DIM == h.
    head_sel = (jnp.arange(HIDDEN, dtype=jnp.int32)[None, :] // HEAD_DIM
                == jnp.arange(NUM_HEADS, dtype=jnp.int32)[:, None])
    head_sel = head_sel.astype(jnp.float32).reshape(NUM_HEADS, 1, HIDDEN)

    row_spec = pl.BlockSpec((TQ, H), lambda i: (i, 0))
    ctx_spec = pl.BlockSpec((Mk, H), lambda i: (0, 0))
    mask_spec = pl.BlockSpec((TQ, Mk), lambda i: (i, 0))
    hsel_spec = pl.BlockSpec((NUM_HEADS, 1, H), lambda i: (0, 0, 0))
    w_spec = pl.BlockSpec((H, H), lambda i: (0, 0))
    vec_spec = pl.BlockSpec((1, H), lambda i: (0, 0))

    out2 = pl.pallas_call(
        cross_attn_kernel,
        out_shape=jax.ShapeDtypeStruct((M, H), x.dtype),
        grid=(num_q_tiles,),
        in_specs=[row_spec, ctx_spec, mask_spec, hsel_spec,
                  w_spec, vec_spec,   # query
                  w_spec, vec_spec,   # key
                  w_spec, vec_spec,   # value
                  w_spec, vec_spec,   # output dense
                  vec_spec, vec_spec],  # LN gamma, beta
        out_specs=pl.BlockSpec((TQ, H), lambda i: (i, 0)),
        compiler_params=pltpu.CompilerParams(
            dimension_semantics=("parallel",)),
    )(x2, c2, add_mask, head_sel,
      params["wq"], params["bq"], params["wk"], params["bk"],
      params["wv"], params["bv"], params["wo"], params["bo"],
      params["gamma"], params["beta"])
    return out2.reshape(B, Sq, H)


def _reference(x, ctx, mask01, params):
    """Pure-JAX reference mirroring the PyTorch forward (eval mode)."""
    B, Sq, H = x.shape
    _, Sk, _ = ctx.shape
    q = x @ params["wq"] + params["bq"][0]
    k = ctx @ params["wk"] + params["bk"][0]
    v = ctx @ params["wv"] + params["bv"][0]

    def split(t, S):
        return t.reshape(B, S, NUM_HEADS, HEAD_DIM).transpose(0, 2, 1, 3)

    qh, kh, vh = split(q, Sq), split(k, Sk), split(v, Sk)
    scores = jnp.einsum("bhqd,bhkd->bhqk", qh, kh) / math.sqrt(HEAD_DIM)
    add_mask = jnp.where(mask01 == 0, -jnp.inf, 0.0)[:, None, None, :]
    scores = scores + add_mask
    probs = jax.nn.softmax(scores, axis=-1)
    ctx_l = jnp.einsum("bhqk,bhkd->bhqd", probs, vh)
    ctx_l = ctx_l.transpose(0, 2, 1, 3).reshape(B, Sq, H)
    o = ctx_l @ params["wo"] + params["bo"][0]
    y = o + x
    mean = y.mean(-1, keepdims=True)
    var = ((y - mean) ** 2).mean(-1, keepdims=True)
    return (y - mean) / jnp.sqrt(var + LN_EPS) * params["gamma"][0] + params["beta"][0]


if __name__ == "__main__":
    key = jax.random.PRNGKey(0)
    ks = jax.random.split(key, 12)

    B, Sq, Sk, H = 2, 8, 8, HIDDEN
    x = jax.random.normal(ks[0], (B, Sq, H), dtype=jnp.float32)
    ctx = jax.random.normal(ks[1], (B, Sk, H), dtype=jnp.float32)
    # attention mask: 1 = attend, 0 = masked (keep at least one 1 per row)
    mask01 = (jax.random.uniform(ks[2], (B, Sk)) > 0.3).astype(jnp.int32)
    mask01 = mask01.at[:, 0].set(1)

    def lin_init(kw, kb):
        bound = 1.0 / math.sqrt(H)
        w = jax.random.uniform(kw, (H, H), minval=-bound, maxval=bound, dtype=jnp.float32)
        b = jax.random.uniform(kb, (1, H), minval=-bound, maxval=bound, dtype=jnp.float32)
        return w, b

    wq, bq = lin_init(ks[3], ks[4])
    wk, bk = lin_init(ks[5], ks[6])
    wv, bv = lin_init(ks[7], ks[8])
    wo, bo = lin_init(ks[9], ks[10])
    params = dict(wq=wq, bq=bq, wk=wk, bk=bk, wv=wv, bv=bv, wo=wo, bo=bo,
                  gamma=jnp.ones((1, H), jnp.float32),
                  beta=jnp.zeros((1, H), jnp.float32))

    out = bert_cross_attention(x, ctx, mask01, params)
    out = jax.block_until_ready(out)

    ref = _reference(x, ctx, mask01, params)
    assert out.shape == (B, Sq, H)
    # Tolerance accounts for the approximate (EUP) reciprocal in the softmax denom.
    assert jnp.allclose(out, ref, atol=5e-3, rtol=5e-3), "mismatch vs reference"

    print("KERNEL_OK")
</pallas_src>

<mosaic_0001>
module attributes {stable_mosaic.version = 11 : i64} {
  func.func @cross_attn_kernel(%arg0: i32, %arg1: memref<16x32xf32, #tpu.memory_space<vmem>>, %arg2: memref<16x32xf32, #tpu.memory_space<vmem>>, %arg3: memref<16x16xf32, #tpu.memory_space<vmem>>, %arg4: memref<4x1x32xf32, #tpu.memory_space<vmem>>, %arg5: memref<32x32xf32, #tpu.memory_space<vmem>>, %arg6: memref<1x32xf32, #tpu.memory_space<vmem>>, %arg7: memref<32x32xf32, #tpu.memory_space<vmem>>, %arg8: memref<1x32xf32, #tpu.memory_space<vmem>>, %arg9: memref<32x32xf32, #tpu.memory_space<vmem>>, %arg10: memref<1x32xf32, #tpu.memory_space<vmem>>, %arg11: memref<32x32xf32, #tpu.memory_space<vmem>>, %arg12: memref<1x32xf32, #tpu.memory_space<vmem>>, %arg13: memref<1x32xf32, #tpu.memory_space<vmem>>, %arg14: memref<1x32xf32, #tpu.memory_space<vmem>>, %arg15: memref<16x32xf32, #tpu.memory_space<vmem>>) attributes {dimension_semantics = [#tpu.dimension_semantics<parallel>], iteration_bounds = array<i64: 1>, scalar_prefetch = 0 : i64, scratch_operands = 0 : i64, tpu.core_type = #tpu.core_type<tc>, window_params = [{transform_indices = @transform_0, window_bounds = array<i64: 16, 32>}, {pipeline_mode = #tpu.pipeline_mode<synchronous>, transform_indices = @transform_1, window_bounds = array<i64: 16, 32>}, {transform_indices = @transform_2, window_bounds = array<i64: 16, 16>}, {pipeline_mode = #tpu.pipeline_mode<synchronous>, transform_indices = @transform_3, window_bounds = array<i64: 4, 1, 32>}, {pipeline_mode = #tpu.pipeline_mode<synchronous>, transform_indices = @transform_4, window_bounds = array<i64: 32, 32>}, {pipeline_mode = #tpu.pipeline_mode<synchronous>, transform_indices = @transform_5, window_bounds = array<i64: 1, 32>}, {pipeline_mode = #tpu.pipeline_mode<synchronous>, transform_indices = @transform_6, window_bounds = array<i64: 32, 32>}, {pipeline_mode = #tpu.pipeline_mode<synchronous>, transform_indices = @transform_7, window_bounds = array<i64: 1, 32>}, {pipeline_mode = #tpu.pipeline_mode<synchronous>, transform_indices = @transform_8, window_bounds = array<i64: 32, 32>}, {pipeline_mode = #tpu.pipeline_mode<synchronous>, transform_indices = @transform_9, window_bounds = array<i64: 1, 32>}, {pipeline_mode = #tpu.pipeline_mode<synchronous>, transform_indices = @transform_10, window_bounds = array<i64: 32, 32>}, {pipeline_mode = #tpu.pipeline_mode<synchronous>, transform_indices = @transform_11, window_bounds = array<i64: 1, 32>}, {pipeline_mode = #tpu.pipeline_mode<synchronous>, transform_indices = @transform_12, window_bounds = array<i64: 1, 32>}, {pipeline_mode = #tpu.pipeline_mode<synchronous>, transform_indices = @transform_13, window_bounds = array<i64: 1, 32>}, {transform_indices = @transform_14, window_bounds = array<i64: 16, 32>}]} {
    %c0 = arith.constant 0 : index
    %c0_0 = arith.constant 0 : index
    %0 = vector.load %arg1[%c0, %c0_0] : memref<16x32xf32, #tpu.memory_space<vmem>>, vector<16x32xf32>
    %c0_1 = arith.constant 0 : index
    %c0_2 = arith.constant 0 : index
    %1 = vector.load %arg2[%c0_1, %c0_2] : memref<16x32xf32, #tpu.memory_space<vmem>>, vector<16x32xf32>
    %c0_3 = arith.constant 0 : index
    %c0_4 = arith.constant 0 : index
    %c0_5 = arith.constant 0 : index
    %2 = vector.load %arg4[%c0_3, %c0_4, %c0_5] : memref<4x1x32xf32, #tpu.memory_space<vmem>>, vector<4x1x32xf32>
    %c0_6 = arith.constant 0 : index
    %c0_7 = arith.constant 0 : index
    %3 = vector.load %arg3[%c0_6, %c0_7] : memref<16x16xf32, #tpu.memory_space<vmem>>, vector<16x16xf32>
    %c0_8 = arith.constant 0 : index
    %c0_9 = arith.constant 0 : index
    %4 = vector.load %arg5[%c0_8, %c0_9] : memref<32x32xf32, #tpu.memory_space<vmem>>, vector<32x32xf32>
    %cst = arith.constant dense<0.000000e+00> : vector<16x32xf32>
    %5 = tpu.matmul %0, %4, %cst {dimension_numbers = #tpu.dot_dimension_numbers<[1], [0], [0], [1], [0, 0, 1, 1], [], []>} : vector<16x32xf32>, vector<32x32xf32>, vector<16x32xf32> -> vector<16x32xf32>
    %c0_10 = arith.constant 0 : index
    %c0_11 = arith.constant 0 : index
    %6 = vector.load %arg6[%c0_10, %c0_11] : memref<1x32xf32, #tpu.memory_space<vmem>>, vector<1x32xf32>
    %7 = vector.broadcast %6 : vector<1x32xf32> to vector<16x32xf32>
    %8 = arith.addf %5, %7 : vector<16x32xf32>
    %c0_12 = arith.constant 0 : index
    %c0_13 = arith.constant 0 : index
    %9 = vector.load %arg7[%c0_12, %c0_13] : memref<32x32xf32, #tpu.memory_space<vmem>>, vector<32x32xf32>
    %cst_14 = arith.constant dense<0.000000e+00> : vector<16x32xf32>
    %10 = tpu.matmul %1, %9, %cst_14 {dimension_numbers = #tpu.dot_dimension_numbers<[1], [0], [0], [1], [0, 0, 1, 1], [], []>} : vector<16x32xf32>, vector<32x32xf32>, vector<16x32xf32> -> vector<16x32xf32>
    %c0_15 = arith.constant 0 : index
    %c0_16 = arith.constant 0 : index
    %11 = vector.load %arg8[%c0_15, %c0_16] : memref<1x32xf32, #tpu.memory_space<vmem>>, vector<1x32xf32>
    %12 = vector.broadcast %11 : vector<1x32xf32> to vector<16x32xf32>
    %13 = arith.addf %10, %12 : vector<16x32xf32>
    %c0_17 = arith.constant 0 : index
    %c0_18 = arith.constant 0 : index
    %14 = vector.load %arg9[%c0_17, %c0_18] : memref<32x32xf32, #tpu.memory_space<vmem>>, vector<32x32xf32>
    %cst_19 = arith.constant dense<0.000000e+00> : vector<16x32xf32>
    %15 = tpu.matmul %1, %14, %cst_19 {dimension_numbers = #tpu.dot_dimension_numbers<[1], [0], [0], [1], [0, 0, 1, 1], [], []>} : vector<16x32xf32>, vector<32x32xf32>, vector<16x32xf32> -> vector<16x32xf32>
    %c0_20 = arith.constant 0 : index
    %c0_21 = arith.constant 0 : index
    %16 = vector.load %arg10[%c0_20, %c0_21] : memref<1x32xf32, #tpu.memory_space<vmem>>, vector<1x32xf32>
    %17 = vector.broadcast %16 : vector<1x32xf32> to vector<16x32xf32>
    %18 = arith.addf %15, %17 : vector<16x32xf32>
    %19 = vector.shape_cast %8 : vector<16x32xf32> to vector<1x16x32xf32>
    %20 = vector.broadcast %19 : vector<1x16x32xf32> to vector<4x16x32xf32>
    %21 = vector.broadcast %2 : vector<4x1x32xf32> to vector<4x16x32xf32>
    %22 = arith.mulf %20, %21 : vector<4x16x32xf32>
    %23 = vector.shape_cast %13 : vector<16x32xf32> to vector<1x16x32xf32>
    %24 = vector.shape_cast %23 : vector<1x16x32xf32> to vector<1x16x32xf32>
    %25 = vector.broadcast %24 : vector<1x16x32xf32> to vector<4x16x32xf32>
    "tpu.trace_start"() <{level = 10 : i32, message = "hqd,hkd->hqk"}> : () -> ()
    %cst_22 = arith.constant dense<0.000000e+00> : vector<4x16x16xf32>
    %26 = tpu.matmul %22, %25, %cst_22 {dimension_numbers = #tpu.dot_dimension_numbers<[2], [2], [1], [1], [0, 0, 0, 1, 1, 1], [0], [0]>} : vector<4x16x32xf32>, vector<4x16x32xf32>, vector<4x16x16xf32> -> vector<4x16x16xf32>
    "tpu.trace_stop"() : () -> ()
    %cst_23 = arith.constant 0.353553385 : f32
    %27 = vector.broadcast %cst_23 : f32 to vector<4x16x16xf32>
    %28 = arith.mulf %26, %27 : vector<4x16x16xf32>
    %29 = vector.shape_cast %3 : vector<16x16xf32> to vector<1x16x16xf32>
    %30 = vector.broadcast %29 : vector<1x16x16xf32> to vector<4x16x16xf32>
    %31 = arith.addf %28, %30 : vector<4x16x16xf32>
    %cst_24 = arith.constant dense<0xFF800000> : vector<4x16xf32>
    %32 = vector.multi_reduction <maximumf>, %31, %cst_24 [2] : vector<4x16x16xf32> to vector<4x16xf32>
    %33 = vector.shape_cast %32 : vector<4x16xf32> to vector<4x16x1xf32>
    %34 = vector.broadcast %33 : vector<4x16x1xf32> to vector<4x16x16xf32>
    %35 = arith.subf %31, %34 : vector<4x16x16xf32>
    %36 = math.exp %35 : vector<4x16x16xf32>
    %cst_25 = arith.constant dense<0.000000e+00> : vector<4x16xf32>
    %37 = vector.multi_reduction <add>, %36, %cst_25 [2] : vector<4x16x16xf32> to vector<4x16xf32>
    %38 = vector.shape_cast %37 : vector<4x16xf32> to vector<4x16x1xf32>
    %39 = tpu.reciprocal %38 {approx = true} : vector<4x16x1xf32> -> vector<4x16x1xf32>
    %40 = vector.broadcast %39 : vector<4x16x1xf32> to vector<4x16x16xf32>
    %41 = arith.mulf %36, %40 : vector<4x16x16xf32>
    %42 = vector.shape_cast %18 : vector<16x32xf32> to vector<1x16x32xf32>
    %43 = vector.broadcast %42 : vector<1x16x32xf32> to vector<4x16x32xf32>
    %44 = vector.broadcast %2 : vector<4x1x32xf32> to vector<4x16x32xf32>
    %45 = arith.mulf %43, %44 : vector<4x16x32xf32>
    "tpu.trace_start"() <{level = 10 : i32, message = "hqk,hkd->hqd"}> : () -> ()
    %cst_26 = arith.constant dense<0.000000e+00> : vector<4x16x32xf32>
    %46 = tpu.matmul %41, %45, %cst_26 {dimension_numbers = #tpu.dot_dimension_numbers<[2], [1], [1], [2], [0, 0, 0, 1, 1, 2], [0], [0]>} : vector<4x16x16xf32>, vector<4x16x32xf32>, vector<4x16x32xf32> -> vector<4x16x32xf32>
    "tpu.trace_stop"() : () -> ()
    %cst_27 = arith.constant dense<0.000000e+00> : vector<16x32xf32>
    %47 = vector.multi_reduction <add>, %46, %cst_27 [0] : vector<4x16x32xf32> to vector<16x32xf32>
    %c0_28 = arith.constant 0 : index
    %c0_29 = arith.constant 0 : index
    %48 = vector.load %arg11[%c0_28, %c0_29] : memref<32x32xf32, #tpu.memory_space<vmem>>, vector<32x32xf32>
    %cst_30 = arith.constant dense<0.000000e+00> : vector<16x32xf32>
    %49 = tpu.matmul %47, %48, %cst_30 {dimension_numbers = #tpu.dot_dimension_numbers<[1], [0], [0], [1], [0, 0, 1, 1], [], []>} : vector<16x32xf32>, vector<32x32xf32>, vector<16x32xf32> -> vector<16x32xf32>
    %c0_31 = arith.constant 0 : index
    %c0_32 = arith.constant 0 : index
    %50 = vector.load %arg12[%c0_31, %c0_32] : memref<1x32xf32, #tpu.memory_space<vmem>>, vector<1x32xf32>
    %51 = vector.broadcast %50 : vector<1x32xf32> to vector<16x32xf32>
    %52 = arith.addf %49, %51 : vector<16x32xf32>
    %53 = arith.addf %52, %0 : vector<16x32xf32>
    %cst_33 = arith.constant dense<0.000000e+00> : vector<16xf32>
    %54 = vector.multi_reduction <add>, %53, %cst_33 [1] : vector<16x32xf32> to vector<16xf32>
    %55 = vector.shape_cast %54 : vector<16xf32> to vector<16x1xf32>
    %cst_34 = arith.constant 3.200000e+01 : f32
    %56 = vector.broadcast %cst_34 : f32 to vector<16x1xf32>
    %57 = arith.divf %55, %56 : vector<16x1xf32>
    %58 = vector.broadcast %57 : vector<16x1xf32> to vector<16x32xf32>
    %59 = arith.subf %53, %58 : vector<16x32xf32>
    %60 = arith.mulf %59, %59 : vector<16x32xf32>
    %cst_35 = arith.constant dense<0.000000e+00> : vector<16xf32>
    %61 = vector.multi_reduction <add>, %60, %cst_35 [1] : vector<16x32xf32> to vector<16xf32>
    %62 = vector.shape_cast %61 : vector<16xf32> to vector<16x1xf32>
    %cst_36 = arith.constant 3.200000e+01 : f32
    %63 = vector.broadcast %cst_36 : f32 to vector<16x1xf32>
    %64 = arith.divf %62, %63 : vector<16x1xf32>
    %65 = vector.broadcast %57 : vector<16x1xf32> to vector<16x32xf32>
    %66 = arith.subf %53, %65 : vector<16x32xf32>
    %cst_37 = arith.constant 9.99999996E-13 : f32
    %67 = vector.broadcast %cst_37 : f32 to vector<16x1xf32>
    %68 = arith.addf %64, %67 : vector<16x1xf32>
    %69 = math.rsqrt %68 : vector<16x1xf32>
    %70 = vector.broadcast %69 : vector<16x1xf32> to vector<16x32xf32>
    %71 = arith.mulf %66, %70 : vector<16x32xf32>
    %c0_38 = arith.constant 0 : index
    %c0_39 = arith.constant 0 : index
    %72 = vector.load %arg13[%c0_38, %c0_39] : memref<1x32xf32, #tpu.memory_space<vmem>>, vector<1x32xf32>
    %73 = vector.broadcast %72 : vector<1x32xf32> to vector<16x32xf32>
    %74 = arith.mulf %71, %73 : vector<16x32xf32>
    %c0_40 = arith.constant 0 : index
    %c0_41 = arith.constant 0 : index
    %75 = vector.load %arg14[%c0_40, %c0_41] : memref<1x32xf32, #tpu.memory_space<vmem>>, vector<1x32xf32>
    %76 = vector.broadcast %75 : vector<1x32xf32> to vector<16x32xf32>
    %77 = arith.addf %74, %76 : vector<16x32xf32>
    %c0_42 = arith.constant 0 : index
    %c0_43 = arith.constant 0 : index
    %78 = vector.load %arg15[%c0_42, %c0_43] : memref<16x32xf32, #tpu.memory_space<vmem>>, vector<16x32xf32>
    tpu.vector_store %arg15[%c0_42, %c0_43], %77 {strides = array<i32>} : memref<16x32xf32, #tpu.memory_space<vmem>>, vector<16x32xf32>,
    return
  }
  func.func @transform_0(%arg0: i32) -> (i32, i32) {
    %c0_i32 = arith.constant 0 : i32
    %c0_i32_0 = arith.constant 0 : i32
    return %arg0, %c0_i32 : i32, i32
  }
  func.func @transform_1(%arg0: i32) -> (i32, i32) {
    %c0_i32 = arith.constant 0 : i32
    %c0_i32_0 = arith.constant 0 : i32
    %c0_i32_1 = arith.constant 0 : i32
    return %c0_i32, %c0_i32_0 : i32, i32
  }
  func.func @transform_2(%arg0: i32) -> (i32, i32) {
    %c0_i32 = arith.constant 0 : i32
    %c0_i32_0 = arith.constant 0 : i32
    return %arg0, %c0_i32 : i32, i32
  }
  func.func @transform_3(%arg0: i32) -> (i32, i32, i32) {
    %c0_i32 = arith.constant 0 : i32
    %c0_i32_0 = arith.constant 0 : i32
    %c0_i32_1 = arith.constant 0 : i32
    %c0_i32_2 = arith.constant 0 : i32
    return %c0_i32, %c0_i32_0, %c0_i32_1 : i32, i32, i32
  }
  func.func @transform_4(%arg0: i32) -> (i32, i32) {
    %c0_i32 = arith.constant 0 : i32
    %c0_i32_0 = arith.constant 0 : i32
    %c0_i32_1 = arith.constant 0 : i32
    return %c0_i32, %c0_i32_0 : i32, i32
  }
  func.func @transform_5(%arg0: i32) -> (i32, i32) {
    %c0_i32 = arith.constant 0 : i32
    %c0_i32_0 = arith.constant 0 : i32
    %c0_i32_1 = arith.constant 0 : i32
    return %c0_i32, %c0_i32_0 : i32, i32
  }
  func.func @transform_6(%arg0: i32) -> (i32, i32) {
    %c0_i32 = arith.constant 0 : i32
    %c0_i32_0 = arith.constant 0 : i32
    %c0_i32_1 = arith.constant 0 : i32
    return %c0_i32, %c0_i32_0 : i32, i32
  }
  func.func @transform_7(%arg0: i32) -> (i32, i32) {
    %c0_i32 = arith.constant 0 : i32
    %c0_i32_0 = arith.constant 0 : i32
    %c0_i32_1 = arith.constant 0 : i32
    return %c0_i32, %c0_i32_0 : i32, i32
  }
  func.func @transform_8(%arg0: i32) -> (i32, i32) {
    %c0_i32 = arith.constant 0 : i32
    %c0_i32_0 = arith.constant 0 : i32
    %c0_i32_1 = arith.constant 0 : i32
    return %c0_i32, %c0_i32_0 : i32, i32
  }
  func.func @transform_9(%arg0: i32) -> (i32, i32) {
    %c0_i32 = arith.constant 0 : i32
    %c0_i32_0 = arith.constant 0 : i32
    %c0_i32_1 = arith.constant 0 : i32
    return %c0_i32, %c0_i32_0 : i32, i32
  }
  func.func @transform_10(%arg0: i32) -> (i32, i32) {
    %c0_i32 = arith.constant 0 : i32
    %c0_i32_0 = arith.constant 0 : i32
    %c0_i32_1 = arith.constant 0 : i32
    return %c0_i32, %c0_i32_0 : i32, i32
  }
  func.func @transform_11(%arg0: i32) -> (i32, i32) {
    %c0_i32 = arith.constant 0 : i32
    %c0_i32_0 = arith.constant 0 : i32
    %c0_i32_1 = arith.constant 0 : i32
    return %c0_i32, %c0_i32_0 : i32, i32
  }
  func.func @transform_12(%arg0: i32) -> (i32, i32) {
    %c0_i32 = arith.constant 0 : i32
    %c0_i32_0 = arith.constant 0 : i32
    %c0_i32_1 = arith.constant 0 : i32
    return %c0_i32, %c0_i32_0 : i32, i32
  }
  func.func @transform_13(%arg0: i32) -> (i32, i32) {
    %c0_i32 = arith.constant 0 : i32
    %c0_i32_0 = arith.constant 0 : i32
    %c0_i32_1 = arith.constant 0 : i32
    return %c0_i32, %c0_i32_0 : i32, i32
  }
  func.func @transform_14(%arg0: i32) -> (i32, i32) {
    %c0_i32 = arith.constant 0 : i32
    %c0_i32_0 = arith.constant 0 : i32
    return %arg0, %c0_i32 : i32, i32
  }
}

</mosaic_0001>

<bundles_post_ra>
// kernel: tpu_custom_call.1
= control target key start
LH: loop header
LB: loop body
LE: loop exit
PB: predicated region body
PF: predicated region fallthrough
CT: control target
= control target key end

     0   :  { %19 = vsyncpa [#allocation3], 0  ;;  %s2304_s0 = inlined_call_operand.hbm [shape: f32[16,32], index: 0, kind: input, shape index: {}]   ;;  %s2305_s1 = inlined_call_operand.hbm [shape: f32[16,32], index: 1, kind: input, shape index: {}]   ;;  %s2306_s2 = inlined_call_operand.hbm [shape: f32[16,16], index: 2, kind: input, shape index: {}]   ;;  %s2307_s3 = inlined_call_operand.vmem [shape: f32[4,1,32], index: 3, kind: input, shape index: {}]   ;;  %s2308_s4 = inlined_call_operand.hbm [shape: f32[32,32], index: 4, kind: input, shape index: {}]   ;;  %s2309_s5 = inlined_call_operand.vmem [shape: f32[1,32], index: 5, kind: input, shape index: {}]   ;;  %s2310_s6 = inlined_call_operand.hbm [shape: f32[32,32], index: 6, kind: input, shape index: {}]   ;;  %s2311_s7 = inlined_call_operand.hbm [shape: f32[1,32], index: 7, kind: input, shape index: {}]   ;;  %s2312_s8 = inlined_call_operand.hbm [shape: f32[32,32], index: 8, kind: input, shape index: {}]   ;;  %s2313_s9 = inlined_call_operand.hbm [shape: f32[1,32], index: 9, kind: input, shape index: {}]   ;;  %s2314_s10 = inlined_call_operand.vmem [shape: f32[32,32], index: 10, kind: input, shape index: {}]   ;;  %s2315_s11 = inlined_call_operand.vmem [shape: f32[1,32], index: 11, kind: input, shape index: {}]   ;;  %s2316_s12 = inlined_call_operand.vmem [shape: f32[1,32], index: 12, kind: input, shape index: {}]   ;;  %s2317_s13 = inlined_call_operand.vmem [shape: f32[1,32], index: 13, kind: input, shape index: {}]   ;;  %s2318_s14 = inlined_call_operand.hbm [shape: f32[16,32], index: 14, kind: output, shape index: {}]  }
   0x1   :  { %20 = vsyncpa [#allocation6], 0 }
   0x2   :  { %21 = vsyncpa [#allocation9], 0 }
   0x3   :  { %22 = vsyncpa [#allocation12], 0 }
   0x4   :  { %23 = vsyncpa [#allocation15], 0 }
   0x5   :  { %24 = vsyncpa [#allocation4], 0  ;;  %s1936_s29 = smov [#allocation5]   ;;  %s1937_s15 = smov [#allocation8]  }
   0x6   :  { %s42_s30 = sshll.u32 %s1936_s29, 4  ;;  %s68_s16 = sshll.u32 %s1937_s15, 4  ;;  %s43_s30 = int_to_ptr.vmem [resolvable:$true] %s42_s30  ;;  %s2022_s16 = int_to_ptr.vmem [resolvable:$true] %s68_s16 }
   0x7   :  { %s1726_s19 = scalar_lea.hbm %s2305_s1, 256 }
   0x8   :  { %p1727_p0 = scmp.ne.s32.totalorder %s2305_s1, %s1726_s19  ;;  %p1730_p1 = scmp.lt.u32.totalorder %s1726_s19, %s2305_s1 }
   0xa   :  { %p1732_p2 = pnand %p1730_p1, %p1727_p0 }
   0xc   :  { %1735 = shalt.err (!%p1732_p2)
}
   0xd   :  { %s1736_s24 = scalar_lea.vmem %s43_s30, 256  ;;  %p1741_p4 = scmp.lt.s32.totalorder %s43_s30, %s43_s30 }
   0xe   :  { %p1737_p3 = scmp.ne.s32.totalorder %s43_s30, %s1736_s24  ;;  %p1742_p5 = scmp.lt.s32.totalorder %s1736_s24, %s1736_s24 }
  0x10   :  { %p1743_p6 = por %p1742_p5, %p1741_p4 }
  0x12   :  { %p1744_p7 = pnand %p1743_p6, %p1737_p3 }
  0x14   :  { %1747 = shalt.err (!%p1744_p7)
}
  0x15   :  { %s1938_s25 = smov 128   ;;  %s1939_s26 = smov 8  }
  0x16   :  { %48 = dma.hbm_to_vmem [thread:$0]  %s2305_s1, 256, %s43_s30, [#allocation6], %s1938_s25, %s1938_s25, %s1939_s26  }
  0x17   :  { %s1748_s17 = scalar_lea.hbm %s2308_s4, 512 }
  0x18   :  { %p1749_p8 = scmp.ne.s32.totalorder %s2308_s4, %s1748_s17  ;;  %p1752_p9 = scmp.lt.u32.totalorder %s1748_s17, %s2308_s4 }
  0x1a   :  { %p1754_p10 = pnand %p1752_p9, %p1749_p8 }
  0x1c   :  { %1757 = shalt.err (!%p1754_p10)
}
  0x1d   :  { %s1758_s22 = scalar_lea.vmem %s2022_s16, 512  ;;  %p1763_p12 = scmp.lt.s32.totalorder %s2022_s16, %s2022_s16 }
  0x1e   :  { %p1759_p11 = scmp.ne.s32.totalorder %s2022_s16, %s1758_s22  ;;  %p1764_p13 = scmp.lt.s32.totalorder %s1758_s22, %s1758_s22 }
  0x20   :  { %p1765_p0 = por %p1764_p13, %p1763_p12 }
  0x22   :  { %p1766_p1 = pnand %p1765_p0, %p1759_p11 }
  0x24   :  { %1769 = shalt.err (!%p1766_p1)
}
  0x25   :  { %74 = dma.hbm_to_vmem [thread:$0]  %s2308_s4, 512, %s2022_s16, [#allocation9], %s1938_s25, %s1938_s25, %s1939_s26  }
  0x26   :  { %s1940_s23 = smov [#allocation11]   ;;  %s1941_s27 = smov [#allocation2]  }
  0x27   :  { %s95_s24 = sshll.u32 %s1940_s23, 4  ;;  %s30_s28 = sshll.u32 %s1941_s27, 4  ;;  %s96_s24 = int_to_ptr.vmem [resolvable:$true] %s95_s24  ;;  %s2059_s28 = int_to_ptr.vmem [resolvable:$true] %s30_s28 }
  0x28   :  { %s1770_s17 = scalar_lea.hbm %s2311_s7, 16 }
  0x29   :  { %p1771_p2 = scmp.ne.s32.totalorder %s2311_s7, %s1770_s17  ;;  %p1774_p3 = scmp.lt.u32.totalorder %s1770_s17, %s2311_s7 }
  0x2b   :  { %p1776_p4 = pnand %p1774_p3, %p1771_p2 }
  0x2d   :  { %1779 = shalt.err (!%p1776_p4)
}
  0x2e   :  { %s1780_s4 = scalar_lea.vmem %s96_s24, 16  ;;  %s1784_s16 = scalar_lea.vmem %s96_s24, 32 }
  0x2f   :  { %p1781_p5 = scmp.ne.s32.totalorder %s96_s24, %s1780_s4  ;;  %p1785_p6 = scmp.lt.s32.totalorder %s96_s24, %s96_s24 }
  0x30   :  { %p1786_p7 = scmp.lt.s32.totalorder %s1784_s16, %s1780_s4 }
  0x32   :  { %p1787_p8 = por %p1786_p7, %p1785_p6 }
  0x34   :  { %p1788_p9 = pnand %p1787_p8, %p1781_p5 }
  0x36   :  { %1791 = shalt.err (!%p1788_p9)
}
  0x37   :  { %98 = dma.hbm_to_vmem [thread:$0]  %s2311_s7, 16, %s96_s24, [#allocation12]  }
  0x38   :  { %s1792_s27 = scalar_lea.hbm %s2304_s0, 256 }
  0x39   :  { %p1793_p10 = scmp.ne.s32.totalorder %s2304_s0, %s1792_s27  ;;  %p1796_p11 = scmp.lt.u32.totalorder %s1792_s27, %s2304_s0 }
  0x3b   :  { %p1798_p12 = pnand %p1796_p11, %p1793_p10 }
  0x3d   :  { %1801 = shalt.err (!%p1798_p12)
}
  0x3e   :  { %s1802_s19 = scalar_lea.vmem %s2059_s28, 256  ;;  %p1807_p0 = scmp.lt.s32.totalorder %s2059_s28, %s2059_s28 }
  0x3f   :  { %p1803_p13 = scmp.ne.s32.totalorder %s2059_s28, %s1802_s19  ;;  %p1808_p1 = scmp.lt.s32.totalorder %s1802_s19, %s1802_s19 }
  0x41   :  { %p1809_p2 = por %p1808_p1, %p1807_p0 }
  0x43   :  { %p1810_p3 = pnand %p1809_p2, %p1803_p13 }
  0x45   :  { %1813 = shalt.err (!%p1810_p3)
}
  0x46   :  { %36 = dma.hbm_to_vmem [thread:$0]  %s2304_s0, 256, %s2059_s28, [#allocation3], %s1938_s25, %s1938_s25, %s1939_s26  }
  0x47   :  { %s1942_s20 = smov [#allocation7]   ;;  %s1943_s4 = smov [#allocation10]  }
  0x48   :  { %s54_s21 = sshll.u32 %s1942_s20, 4  ;;  %s82_s16 = sshll.u32 %s1943_s4, 4  ;;  %s55_s21 = int_to_ptr.vmem [resolvable:$true] %s54_s21  ;;  %s2093_s16 = int_to_ptr.vmem [resolvable:$true] %s82_s16 }
  0x49   :  { %s1814_s30 = scalar_lea.hbm %s2306_s2, 256 }
  0x4a   :  { %p1815_p4 = scmp.ne.s32.totalorder %s2306_s2, %s1814_s30  ;;  %p1818_p5 = scmp.lt.u32.totalorder %s1814_s30, %s2306_s2 }
  0x4c   :  { %p1820_p6 = pnand %p1818_p5, %p1815_p4 }
  0x4e   :  { %1823 = shalt.err (!%p1820_p6)
}
  0x4f   :  { %s1824_s0 = scalar_lea.vmem %s55_s21, 256  ;;  %p1829_p8 = scmp.lt.s32.totalorder %s55_s21, %s55_s21 }
  0x50   :  { %p1825_p7 = scmp.ne.s32.totalorder %s55_s21, %s1824_s0  ;;  %p1830_p9 = scmp.lt.s32.totalorder %s1824_s0, %s1824_s0 }
  0x52   :  { %p1831_p10 = por %p1830_p9, %p1829_p8 }
  0x54   :  { %p1832_p11 = pnand %p1831_p10, %p1825_p7 }
  0x56   :  { %1835 = shalt.err (!%p1832_p11)
}
  0x57   :  { %60 = dma.hbm_to_vmem [thread:$0]  %s2306_s2, 256, %s55_s21, [#allocation6], %s1938_s25, %s1938_s25, %s1939_s26  }
  0x58   :  { %s1836_s7 = scalar_lea.hbm %s2310_s6, 512 }
  0x59   :  { %p1837_p12 = scmp.ne.s32.totalorder %s2310_s6, %s1836_s7  ;;  %p1840_p13 = scmp.lt.u32.totalorder %s1836_s7, %s2310_s6 }
  0x5b   :  { %p1842_p0 = pnand %p1840_p13, %p1837_p12 }
  0x5d   :  { %1845 = shalt.err (!%p1842_p0)
}
  0x5e   :  { %s1846_s1 = scalar_lea.vmem %s2093_s16, 512  ;;  %p1851_p2 = scmp.lt.s32.totalorder %s2093_s16, %s2093_s16 }
  0x5f   :  { %p1847_p1 = scmp.ne.s32.totalorder %s2093_s16, %s1846_s1  ;;  %p1852_p3 = scmp.lt.s32.totalorder %s1846_s1, %s1846_s1 }
  0x61   :  { %p1853_p4 = por %p1852_p3, %p1851_p2 }
  0x63   :  { %p1854_p5 = pnand %p1853_p4, %p1847_p1 }
  0x65   :  { %1857 = shalt.err (!%p1854_p5)
}
  0x66   :  { %88 = dma.hbm_to_vmem [thread:$0]  %s2310_s6, 512, %s2093_s16, [#allocation9], %s1938_s25, %s1938_s25, %s1939_s26  }
  0x67   :  { %s1944_s30 = smov [#allocation13]   ;;  %s1945_s27 = smov [#allocation14]  }
  0x68   :  { %s104_s23 = sshll.u32 %s1944_s30, 4  ;;  %s117_s29 = sshll.u32 %s1945_s27, 4  ;;  %s105_s23 = int_to_ptr.vmem [resolvable:$true] %s104_s23  ;;  %s118_s29 = int_to_ptr.vmem [resolvable:$true] %s117_s29 }
  0x69   :  { %s1858_s28 = scalar_lea.hbm %s2312_s8, 512 }
  0x6a   :  { %p1859_p6 = scmp.ne.s32.totalorder %s2312_s8, %s1858_s28  ;;  %p1862_p7 = scmp.lt.u32.totalorder %s1858_s28, %s2312_s8 }
  0x6c   :  { %p1864_p8 = pnand %p1862_p7, %p1859_p6 }
  0x6e   :  { %1867 = shalt.err (!%p1864_p8)
}
  0x6f   :  { %s1868_s6 = scalar_lea.vmem %s105_s23, 512  ;;  %p1873_p10 = scmp.lt.s32.totalorder %s105_s23, %s105_s23 }
  0x70   :  { %p1869_p9 = scmp.ne.s32.totalorder %s105_s23, %s1868_s6  ;;  %p1874_p11 = scmp.lt.s32.totalorder %s1868_s6, %s1868_s6 }
  0x72   :  { %p1875_p12 = por %p1874_p11, %p1873_p10 }
  0x74   :  { %p1876_p13 = pnand %p1875_p12, %p1869_p9 }
  0x76   :  { %1879 = shalt.err (!%p1876_p13)
}
  0x77   :  { %110 = dma.hbm_to_vmem [thread:$0]  %s2312_s8, 512, %s105_s23, [#allocation12], %s1938_s25, %s1938_s25, %s1939_s26  }
  0x78   :  { %s1880_s22 = scalar_lea.hbm %s2313_s9, 16 }
  0x79   :  { %p1881_p0 = scmp.ne.s32.totalorder %s2313_s9, %s1880_s22  ;;  %p1884_p1 = scmp.lt.u32.totalorder %s1880_s22, %s2313_s9 }
  0x7b   :  { %p1886_p2 = pnand %p1884_p1, %p1881_p0 }
  0x7d   :  { %1889 = shalt.err (!%p1886_p2)
}
  0x7e   :  { %s1890_s27 = scalar_lea.vmem %s118_s29, 16  ;;  %s1894_s15 = scalar_lea.vmem %s118_s29, 32 }
  0x7f   :  { %p1891_p3 = scmp.ne.s32.totalorder %s118_s29, %s1890_s27  ;;  %p1895_p4 = scmp.lt.s32.totalorder %s118_s29, %s118_s29 }
  0x80   :  { %p1896_p5 = scmp.lt.s32.totalorder %s1894_s15, %s1890_s27 }
  0x82   :  { %p1897_p6 = por %p1896_p5, %p1895_p4 }
  0x84   :  { %p1898_p7 = pnand %p1897_p6, %p1891_p3 }
  0x86   :  { %1901 = shalt.err (!%p1898_p7)
}
  0x87   :  { %120 = dma.hbm_to_vmem [thread:$0]  %s2313_s9, 16, %s118_s29, [#allocation15]  }
  0x88   :  { %1924 = dma.done.wait [#allocation3], 256  }
  0x89   :  { %1925 = vsyncadd [#allocation3], 4294967040 }
  0x8a   :  { %1926 = dma.done.wait [#allocation6], 512  }
  0x8b   :  { %1927 = vsyncadd [#allocation6], 4294966784 }
  0x8c   :  { %1928 = dma.done.wait [#allocation9], 1024  }
  0x8d   :  { %1929 = vsyncadd [#allocation9], 4294966272 }
  0x8e   :  { %1930 = dma.done.wait [#allocation12], 528  }
  0x8f   :  { %1931 = vsyncadd [#allocation12], 4294966768 }
  0x90   :  { %1932 = dma.done.wait [#allocation15], 16  }
  0x91   :  { %1933 = vsyncadd [#allocation15], 4294967280  ;;  %v256_v0 = vld [vmem:[#allocation10] sm:$0xff]  ;;  %v257_v1 = vld [vmem:[#allocation10 + $0x8] sm:$0xff]  ;;  %vm174_vm0 = vcmask 261120   ;;  %vm812_vm2 = vcmask 130048  }
  0x92   :  { %v258_v2 = vld [vmem:[#allocation10 + $0x10] sm:$0xff]  ;;  %v1615_v3 = vpack.c.bf16 %v257_v1, %v256_v0  ;;  %v259_v4 = vld [vmem:[#allocation10 + $0x18] sm:$0xff]  ;;  %v163_v5 = vld [vmem:[#allocation8] sm:$0xff]  ;;  %s1946_s8 = smov [#allocation16]  }
  0x93   :  { %v164_v6 = vld [vmem:[#allocation8 + $0x8] sm:$0xff]  ;;  %v1619_v7 = vpack.c.bf16 %v259_v4, %v258_v2  ;;  %v155_v9 = vld [vmem:[#allocation5] sm:$0xff]  ;;  %v165_v10 = vld [vmem:[#allocation8 + $0x10] sm:$0xff]  ;;  %s1393_s23 = sshll.u32 %s1946_s8, 4  ;;  %s1394_s23 = int_to_ptr.vmem [resolvable:$true] %s1393_s23 }
  0x94   :  { %v1607_v8 = vpack.c.bf16 %v164_v6, %v163_v5  ;;  %1616 = vmatprep.subr.bf16.mxu1 %v1615_v3  ;;  %1526 = vmatprep.mubr.msk.f32.mxu1 %vm174_vm0, %v155_v9  ;;  %v166_v11 = vld [vmem:[#allocation8 + $0x18] sm:$0xff]  ;;  %v2158_v12 = vld [vmem:[#allocation2] sm:$0xff]  ;;  %v348_v14 = vld [vmem:[#allocation13] sm:$0xff]  ;;  %s1902_s9 = scalar_lea.vmem %s1394_s23, 256  ;;  %p1907_p9 = scmp.lt.s32.totalorder %s1394_s23, %s1394_s23 }
  0x95   :  { %1618 = vmatpush3.bf16.msra.mxu1 %v1615_v3  ;;  %v1611_v13 = vpack.c.bf16 %v166_v11, %v165_v10  ;;  %v349_v15 = vld [vmem:[#allocation13 + $0x8] sm:$0xff]  ;;  %1515 = vmatprep.mubr.msk.f32.mxu0 %vm174_vm0, %v2158_v12  ;;  %v350_v17 = vld [vmem:[#allocation13 + $0x10] sm:$0xff]  ;;  %v351_v18 = vld [vmem:[#allocation13 + $0x18] sm:$0xff]  ;;  %p1903_p8 = scmp.ne.s32.totalorder %s1394_s23, %s1902_s9  ;;  %p1908_p10 = scmp.lt.s32.totalorder %s1902_s9, %s1902_s9 }
  0x96   :  { %1608 = vmatprep.subr.bf16.mxu0 %v1607_v8  ;;  %1620 = vmatprep.subr.bf16.mxu1 %v1619_v7  ;;  %v1623_v16 = vpack.c.bf16 %v349_v15, %v348_v14  ;;  %v156_v19 = vld [vmem:[#allocation5 + $0x8] sm:$0xff]  ;;  %v2162_v20 = vld [vmem:[#allocation2 + $0x8] sm:$0xff]  ;;  %v1627_v21 = vpack.c.bf16 %v351_v18, %v350_v17  ;;  %v1412_v22 = vld [vmem:[#allocation11] ss:$0 sm:$0xff] }
  0x97   :  { %1610 = vmatpush3.bf16.msra.mxu0 %v1607_v8  ;;  %v1409_v24 = vld [vmem:[%s2309_s5] ss:$0 sm:$0xff]  ;;  %v1419_v30 = vld [vmem:[%s2307_s3 + $0x1] ss:$0 sm:$0xff]  ;;  %vm2180_vm1 = vmpackc.low %vm174_vm0, %vm174_vm0  ;;  %p1909_p11 = por %p1908_p10, %p1907_p9 }
  0x98   :  { %1612 = vmatprep.subr.bf16.mxu0 %v1611_v13  ;;  %v1418_v29 = vld [vmem:[%s2307_s3] ss:$0 sm:$0xff]  ;;  %v1420_v39 = vld [vmem:[%s2307_s3 + $0x2] ss:$0 sm:$0xff]  ;;  %v1421_v41 = vld [vmem:[%s2307_s3 + $0x3] ss:$0 sm:$0xff] }
  0x99   :  { %1622 = vmatpush3.bf16.msra.mxu1 %v1619_v7  ;;  %v1415_v48 = vld [vmem:[#allocation14] ss:$0 sm:$0xff]  ;;  %v161_v4 = vld [vmem:[#allocation7] sm:$0xff]  ;;  %v162_v5 = vld [vmem:[#allocation7 + $0x8] sm:$0xff]  ;;  %p1910_p12 = pnand %p1909_p11, %p1903_p8 }
  0x9b   :  { %1614 = vmatpush3.bf16.msra.mxu0 %v1611_v13 }
  0x9c   :  { %1624 = vmatprep.subr.bf16.mxu0 %v1623_v16  ;;  %1527 = vmatmul.mubr.msk.f32.vlgmr.msra.gmra.mrb[0].mxu1 %vm174_vm0, %v156_v19 }
  0x9e   :  { %1516 = vmatmul.mubr.msk.f32.vlgmr.msra.gmra.mrb[0].mxu0 %vm174_vm0, %v2162_v20 }
  0x9f   :  { %1626 = vmatpush3.bf16.msra.mxu0 %v1623_v16  ;;  %1537 = vmatprep.mubr.msk.f32.mxu0 %vm174_vm0, %v155_v9 }
  0xa0   :  { %1628 = vmatprep.subr.bf16.mxu0 %v1627_v21 }
  0xa3   :  { %1630 = vmatpush3.bf16.msra.mxu0 %v1627_v21 }
  0xa6   :  { %1538 = vmatmul.mubr.msk.f32.vlgmr.msra.gmra.mrb[2].mxu0 %vm174_vm0, %v156_v19 }
 0x16f   :  { %v1528_v23 = vpop.f32.mrb[0].mxu1 }
 0x170   :  { %v345_v25 = vadd.f32 %v1528_v23, %v1412_v22  ;;  %v339_v26 = vpop.f32.mrb[1].mxu1 }
 0x171   :  { %v1517_v27 = vpop.f32.mrb[0].mxu0  ;;  %v340_v28 = vadd.f32 %v1412_v22, %v339_v26 }
 0x172   :  { %v247_v31 = vpop.f32.mrb[1].mxu0  ;;  %v253_v37 = vadd.f32 %v1517_v27, %v1409_v24 }
 0x173   :  { %v248_v33 = vadd.f32 %v1409_v24, %v247_v31  ;;  %v1631_v34 = vpack.c.bf16 %v345_v25, %v340_v28 }
 0x174   :  { %v459_v42 = vmul.f32 %v1418_v29, %v253_v37  ;;  %v461_v43 = vmul.f32 %v1419_v30, %v253_v37  ;;  %v463_v46 = vmul.f32 %v1420_v39, %v253_v37  ;;  %v465_v47 = vmul.f32 %v1421_v41, %v253_v37 }
 0x175   :  { %v458_v35 = vmul.f32 %v1418_v29, %v248_v33  ;;  %v460_v36 = vmul.f32 %v1419_v30, %v248_v33  ;;  %1633 = vmatprep.subr.msk.bf16.mxu1 %vm2180_vm1, %v1631_v34  ;;  %1639 = vmatprep.subr.msk.bf16.mxu0 %vm2180_vm1, %v1631_v34  ;;  %v462_v44 = vmul.f32 %v1420_v39, %v248_v33 }
 0x176   :  { %1636 = vmatpush3.bf16.xpose.msk.msra.mxu1 %vm2180_vm1, %v1631_v34  ;;  %1642 = vmatpush3.bf16.xpose.msk.msra.mxu0 %vm2180_vm1, %v1631_v34  ;;  %v464_v45 = vmul.f32 %v1421_v41, %v248_v33 }
 0x177   :  { %1645 = vmatprep.subr.msk.bf16.mxu1 %vm2180_vm1, %v1631_v34  ;;  %1651 = vmatprep.subr.msk.bf16.mxu0 %vm2180_vm1, %v1631_v34 }
 0x178   :  { %1544 = vmatprep.mubr.msk.f32.mxu1 %vm174_vm0, %v458_v35  ;;  %1551 = vmatprep.mubr.msk.f32.mxu0 %vm174_vm0, %v460_v36 }
 0x179   :  { %v1539_v38 = vpop.f32.mrb[2].mxu0 }
 0x17a   :  { %v425_v40 = vpop.f32.mrb[3].mxu0  ;;  %v431_v49 = vadd.f32 %v1539_v38, %v1415_v48 }
 0x17b   :  { %v426_v50 = vadd.f32 %v1415_v48, %v425_v40 }
 0x17c   :  { %v902_v52 = vmul.f32 %v1418_v29, %v431_v49  ;;  %v904_v55 = vmul.f32 %v1419_v30, %v431_v49  ;;  %v906_v57 = vmul.f32 %v1420_v39, %v431_v49  ;;  %v908_v59 = vmul.f32 %v1421_v41, %v431_v49 }
 0x17d   :  { %1545 = vmatmul.mubr.msk.f32.vlgmr.msra.gmra.mrb[2].mxu1 %vm174_vm0, %v459_v42  ;;  %1552 = vmatmul.mubr.msk.f32.vlgmr.msra.gmra.mrb[4].mxu0 %vm174_vm0, %v461_v43  ;;  %v901_v51 = vmul.f32 %v1418_v29, %v426_v50  ;;  %v903_v54 = vmul.f32 %v1419_v30, %v426_v50  ;;  %v905_v56 = vmul.f32 %v1420_v39, %v426_v50 }
 0x17e   :  { %1648 = vmatpush3.bf16.xpose.msk.msra.mxu1 %vm2180_vm1, %v1631_v34  ;;  %1558 = vmatprep.mubr.msk.f32.mxu1 %vm174_vm0, %v462_v44  ;;  %v907_v58 = vmul.f32 %v1421_v41, %v426_v50 }
 0x17f   :  { %1654 = vmatpush3.bf16.xpose.msk.msra.mxu0 %vm2180_vm1, %v1631_v34  ;;  %1565 = vmatprep.mubr.msk.f32.mxu0 %vm174_vm0, %v464_v45  ;;  %v1655_v53 = vpack.c.bf16 %v902_v52, %v901_v51  ;;  %v2214_v60 = vpack.c.bf16 %v904_v55, %v903_v54  ;;  %v2216_v61 = vpack.c.bf16 %v906_v57, %v905_v56 }
 0x180   :  { %v2218_v62 = vpack.c.bf16 %v908_v59, %v907_v58 }
 0x181   :  { %1656 = vmatprep.subr.bf16.mxu1 %v1655_v53 }
 0x185   :  { %1559 = vmatmul.mubr.msk.f32.vlgmr.msra.gmra.mrb[4].mxu1 %vm174_vm0, %v463_v46 }
 0x186   :  { %1566 = vmatmul.mubr.msk.f32.vlgmr.msra.gmra.mrb[6].mxu0 %vm174_vm0, %v465_v47  ;;  %1658 = vmatpush3.bf16.msra.mxu1 %v1655_v53 }
 0x187   :  { %1660 = vmatprep.subr.bf16.mxu1 %v2214_v60 }
 0x250   :  { %v1546_v63 = vpop.f32.mrb[2].mxu1  ;;  %v1553_v0 = vpop.f32.mrb[4].mxu0 }
 0x251   :  { %v799_v1 = vmul.f32 0.35355338, %v1553_v0  ;;  %v544_v2 = vpop.f32.mrb[3].mxu1  ;;  %v625_v3 = vpop.f32.mrb[5].mxu0  ;;  %v797_v6 = vmul.f32 0.35355338, %v1546_v63 }
 0x252   :  { %v796_v7 = vmul.f32 0.35355338, %v544_v2  ;;  %v798_v8 = vmul.f32 0.35355338, %v625_v3 }
 0x253   :  { %v807_v11 = vadd.f32 %v799_v1, %v162_v5  ;;  %v805_v15 = vadd.f32 %v797_v6, %v162_v5 }
 0x254   :  { %v806_v9 = vadd.f32 %v798_v8, %v161_v4  ;;  %v804_v10 = vadd.f32 %v796_v7, %v161_v4 }
 0x255   :  { %v822_v21 = vsel %vm812_vm2, %v807_v11, -inf  ;;  %v816_v25 = vsel %vm812_vm2, %v805_v15, -inf }
 0x256   :  { %v819_v13 = vsel %vm812_vm2, %v806_v9, -inf  ;;  %v813_v14 = vsel %vm812_vm2, %v804_v10, -inf }
 0x257   :  { %820 = vmax.xlane.f32.xlu1 %v819_v13  ;;  %814 = vmax.xlane.f32.xlu0 %v813_v14 }
 0x258   :  { %v1560_v16 = vpop.f32.mrb[4].mxu1 }
 0x259   :  { %v801_v17 = vmul.f32 0.35355338, %v1560_v16  ;;  %v1567_v18 = vpop.f32.mrb[6].mxu0  ;;  %v706_v19 = vpop.f32.mrb[5].mxu1 }
 0x25a   :  { %v803_v22 = vmul.f32 0.35355338, %v1567_v18  ;;  %v800_v23 = vmul.f32 0.35355338, %v706_v19  ;;  %v787_v24 = vpop.f32.mrb[7].mxu0 }
 0x25b   :  { %v802_v26 = vmul.f32 0.35355338, %v787_v24  ;;  %823 = vmax.xlane.f32.xlu1 %v822_v21  ;;  %817 = vmax.xlane.f32.xlu0 %v816_v25  ;;  %v809_v27 = vadd.f32 %v801_v17, %v162_v5 }
 0x25c   :  { %v808_v28 = vadd.f32 %v800_v23, %v161_v4  ;;  %v811_v31 = vadd.f32 %v803_v22, %v162_v5 }
 0x25d   :  { %v828_v29 = vsel %vm812_vm2, %v809_v27, -inf  ;;  %v810_v32 = vadd.f32 %v802_v26, %v161_v4 }
 0x25e   :  { %v825_v30 = vsel %vm812_vm2, %v808_v28, -inf  ;;  %v834_v33 = vsel %vm812_vm2, %v811_v31, -inf }
 0x25f   :  { %829 = vmax.xlane.f32.xlu1 %v828_v29  ;;  %826 = vmax.xlane.f32.xlu0 %v825_v30  ;;  %v831_v34 = vsel %vm812_vm2, %v810_v32, -inf }
 0x263   :  { %835 = vmax.xlane.f32.xlu1 %v834_v33  ;;  %832 = vmax.xlane.f32.xlu0 %v831_v34 }
 0x2e4   :  { %v821_v35 = vpop.xlane.xlu1 %820  ;;  %v815_v36 = vpop.xlane.xlu0 %814 }
 0x2e5   :  { %v839_v37 = vsub.f32 %v806_v9, %v821_v35  ;;  %v837_v38 = vsub.f32 %v804_v10, %v815_v36 }
 0x2e7   :  { %v845_v39 = vmul.f32 1.442695, %v837_v38  ;;  %v849_v40 = vmul.f32 1.442695, %v839_v37 }
 0x2e8   :  { %v824_v41 = vpop.xlane.xlu1 %823  ;;  %v818_v42 = vpop.xlane.xlu0 %817 }
 0x2e9   :  { %v840_v43 = vsub.f32 %v807_v11, %v824_v41  ;;  %v838_v44 = vsub.f32 %v805_v15, %v818_v42  ;;  %1690 = vpow2.f32 %v845_v39  ;;  %v1248_v39 = vld [vmem:[%s2314_s10 + $0x8] sm:$0xff]  ;;  %v1250_v41 = vld [vmem:[%s2314_s10 + $0x18] sm:$0xff] }
 0x2ea   :  { %1692 = vpow2.f32 %v849_v40 }
 0x2eb   :  { %v847_v45 = vmul.f32 1.442695, %v838_v44  ;;  %v851_v46 = vmul.f32 1.442695, %v840_v43 }
 0x2ec   :  { %v830_v47 = vpop.xlane.xlu1 %829  ;;  %v827_v48 = vpop.xlane.xlu0 %826 }
 0x2ed   :  { %v842_v49 = vsub.f32 %v809_v27, %v830_v47  ;;  %v841_v50 = vsub.f32 %v808_v28, %v827_v48  ;;  %1694 = vpow2.f32 %v847_v45 }
 0x2ee   :  { %1696 = vpow2.f32 %v851_v46 }
 0x2ef   :  { %v853_v51 = vmul.f32 1.442695, %v841_v50  ;;  %v855_v52 = vmul.f32 1.442695, %v842_v49 }
 0x2f0   :  { %v836_v53 = vpop.xlane.xlu1 %835  ;;  %v833_v54 = vpop.xlane.xlu0 %832 }
 0x2f1   :  { %v844_v55 = vsub.f32 %v811_v31, %v836_v53  ;;  %v843_v56 = vsub.f32 %v810_v32, %v833_v54  ;;  %1698 = vpow2.f32 %v853_v51 }
 0x2f2   :  { %1700 = vpow2.f32 %v855_v52 }
 0x2f3   :  { %v857_v57 = vmul.f32 1.442695, %v843_v56  ;;  %v1691_v58 = vpop.eup %1690  ;;  %v859_v59 = vmul.f32 1.442695, %v844_v55 }
 0x2f4   :  { %v861_v63 = vsel %vm812_vm2, %v1691_v58, 0.0  ;;  %v1693_v0 = vpop.eup %1692 }
 0x2f5   :  { %1702 = vpow2.f32 %v857_v57  ;;  %862 = vadd.xlane.f32.xlu0 %v861_v63  ;;  %v867_v3 = vsel %vm812_vm2, %v1693_v0, 0.0 }
 0x2f6   :  { %1704 = vpow2.f32 %v859_v59 }
 0x2f7   :  { %v1695_v1 = vpop.eup %1694 }
 0x2f8   :  { %v864_v2 = vsel %vm812_vm2, %v1695_v1, 0.0  ;;  %v1697_v4 = vpop.eup %1696 }
 0x2f9   :  { %865 = vadd.xlane.f32.xlu1 %v864_v2  ;;  %868 = vadd.xlane.f32.xlu0 %v867_v3  ;;  %v870_v6 = vsel %vm812_vm2, %v1697_v4, 0.0 }
 0x2fb   :  { %v1699_v5 = vpop.eup %1698 }
 0x2fc   :  { %v873_v7 = vsel %vm812_vm2, %v1699_v5, 0.0  ;;  %v1701_v8 = vpop.eup %1700 }
 0x2fd   :  { %871 = vadd.xlane.f32.xlu1 %v870_v6  ;;  %874 = vadd.xlane.f32.xlu0 %v873_v7  ;;  %v876_v10 = vsel %vm812_vm2, %v1701_v8, 0.0 }
 0x2ff   :  { %v1703_v9 = vpop.eup %1702 }
 0x300   :  { %v879_v11 = vsel %vm812_vm2, %v1703_v9, 0.0  ;;  %v1705_v13 = vpop.eup %1704 }
 0x301   :  { %877 = vadd.xlane.f32.xlu1 %v876_v10  ;;  %880 = vadd.xlane.f32.xlu0 %v879_v11  ;;  %v882_v14 = vsel %vm812_vm2, %v1705_v13, 0.0 }
 0x305   :  { %883 = vadd.xlane.f32.xlu1 %v882_v14 }
 0x382   :  { %v863_v15 = vpop.xlane.xlu0 %862 }
 0x383   :  { %1706 = vrcp.f32 %v863_v15 }
 0x386   :  { %v866_v16 = vpop.xlane.xlu1 %865  ;;  %v869_v17 = vpop.xlane.xlu0 %868 }
 0x387   :  { %1708 = vrcp.f32 %v866_v16 }
 0x388   :  { %1710 = vrcp.f32 %v869_v17 }
 0x38a   :  { %v872_v18 = vpop.xlane.xlu1 %871  ;;  %v875_v19 = vpop.xlane.xlu0 %874 }
 0x38b   :  { %1712 = vrcp.f32 %v872_v18 }
 0x38c   :  { %1714 = vrcp.f32 %v875_v19 }
 0x38d   :  { %v1707_v21 = vpop.eup %1706 }
 0x38e   :  { %v878_v22 = vpop.xlane.xlu1 %877  ;;  %v881_v23 = vpop.xlane.xlu0 %880  ;;  %v893_v24 = vmul.f32 %v1707_v21, %v1691_v58 }
 0x38f   :  { %1716 = vrcp.f32 %v878_v22 }
 0x390   :  { %1718 = vrcp.f32 %v881_v23  ;;  %1572 = vmatprep.mubr.msk.f32.mxu1 %vm812_vm2, %v893_v24 }
 0x391   :  { %v1709_v25 = vpop.eup %1708 }
 0x392   :  { %v1711_v26 = vpop.eup %1710  ;;  %v894_v27 = vmul.f32 %v1709_v25, %v1695_v1  ;;  %v884_v28 = vpop.xlane.xlu1 %883 }
 0x393   :  { %1720 = vrcp.f32 %v884_v28  ;;  %v895_v29 = vmul.f32 %v1711_v26, %v1693_v0 }
 0x394   :  { %1573 = vmatmul.mubr.msk.f32.vlgmr.msra.gmra.mrb[6].mxu1 %vm812_vm2, %v894_v27 }
 0x395   :  { %v1713_v30 = vpop.eup %1712  ;;  %1662 = vmatpush3.bf16.msra.mxu1 %v2214_v60  ;;  %1579 = vmatprep.mubr.msk.f32.mxu1 %vm812_vm2, %v895_v29 }
 0x396   :  { %v1715_v31 = vpop.eup %1714  ;;  %v896_v32 = vmul.f32 %v1713_v30, %v1697_v4  ;;  %1664 = vmatprep.subr.bf16.mxu1 %v2216_v61  ;;  %v1446_v4 = vld [vmem:[%s2315_s11] ss:$0 sm:$0xff] }
 0x397   :  { %v897_v33 = vmul.f32 %v1715_v31, %v1699_v5  ;;  %v1449_v30 = vld [vmem:[%s2316_s12] ss:$0 sm:$0xff] }
 0x398   :  { %1580 = vmatmul.mubr.msk.f32.vlgmr.msra.gmra.mrb[8].mxu1 %vm812_vm2, %v896_v32 }
 0x399   :  { %v1717_v34 = vpop.eup %1716  ;;  %1666 = vmatpush3.bf16.msra.mxu1 %v2216_v61  ;;  %1586 = vmatprep.mubr.msk.f32.mxu1 %vm812_vm2, %v897_v33  ;;  %v1247_v61 = vld [vmem:[%s2314_s10] sm:$0xff] }
 0x39a   :  { %v1719_v35 = vpop.eup %1718  ;;  %v898_v36 = vmul.f32 %v1717_v34, %v1701_v8  ;;  %1668 = vmatprep.subr.bf16.mxu1 %v2218_v62  ;;  %v1671_v40 = vpack.c.bf16 %v1248_v39, %v1247_v61  ;;  %v1450_v34 = vld [vmem:[%s2317_s13] ss:$0 sm:$0xff] }
 0x39b   :  { %v899_v37 = vmul.f32 %v1719_v35, %v1703_v9 }
 0x39c   :  { %1587 = vmatmul.mubr.msk.f32.vlgmr.msra.gmra.mrb[10].mxu1 %vm812_vm2, %v898_v36  ;;  %1672 = vmatprep.subr.bf16.mxu0 %v1671_v40 }
 0x39d   :  { %v1721_v60 = vpop.eup %1720  ;;  %1670 = vmatpush3.bf16.msra.mxu1 %v2218_v62  ;;  %1593 = vmatprep.mubr.msk.f32.mxu1 %vm812_vm2, %v899_v37  ;;  %v1249_v62 = vld [vmem:[%s2314_s10 + $0x10] sm:$0xff] }
 0x39e   :  { %v900_v38 = vmul.f32 %v1721_v60, %v1705_v13  ;;  %1674 = vmatpush3.bf16.msra.mxu0 %v1671_v40  ;;  %v1675_v42 = vpack.c.bf16 %v1250_v41, %v1249_v62 }
 0x3a0   :  { %1594 = vmatmul.mubr.msk.f32.vlgmr.msra.gmra.mrb[12].mxu1 %vm812_vm2, %v900_v38  ;;  %1676 = vmatprep.subr.bf16.mxu0 %v1675_v42 }
 0x3a2   :  { %1678 = vmatpush3.bf16.msra.mxu0 %v1675_v42 }
 0x467   :  { %v1574_v43 = vpop.f32.mrb[6].mxu1 }
 0x468   :  { %v981_v44 = vpop.f32.mrb[7].mxu1  ;;  %v1240_v46 = vsel %vm174_vm0, %v1574_v43, 0.0 }
 0x469   :  { %v1233_v49 = vsel %vm174_vm0, %v981_v44, 0.0 }
 0x46b   :  { %v1581_v45 = vpop.f32.mrb[8].mxu1 }
 0x46c   :  { %v1241_v47 = vsel %vm174_vm0, %v1581_v45, 0.0  ;;  %v1062_v48 = vpop.f32.mrb[9].mxu1 }
 0x46d   :  { %v1242_v50 = vadd.f32 %v1241_v47, %v1240_v46  ;;  %v1234_v51 = vsel %vm174_vm0, %v1062_v48, 0.0 }
 0x46e   :  { %v1235_v52 = vadd.f32 %v1234_v51, %v1233_v49 }
 0x46f   :  { %v1588_v53 = vpop.f32.mrb[10].mxu1 }
 0x470   :  { %v1243_v54 = vsel %vm174_vm0, %v1588_v53, 0.0  ;;  %v1143_v55 = vpop.f32.mrb[11].mxu1 }
 0x471   :  { %v1244_v56 = vadd.f32 %v1243_v54, %v1242_v50  ;;  %v1236_v57 = vsel %vm174_vm0, %v1143_v55, 0.0 }
 0x472   :  { %v1237_v58 = vadd.f32 %v1236_v57, %v1235_v52 }
 0x473   :  { %v1595_v59 = vpop.f32.mrb[12].mxu1 }
 0x474   :  { %v1245_v63 = vsel %vm174_vm0, %v1595_v59, 0.0  ;;  %v1224_v0 = vpop.f32.mrb[13].mxu1 }
 0x475   :  { %v1246_v1 = vadd.f32 %v1245_v63, %v1244_v56  ;;  %v1238_v2 = vsel %vm174_vm0, %v1224_v0, 0.0 }
 0x476   :  { %v1239_v3 = vadd.f32 %v1238_v2, %v1237_v58 }
 0x478   :  { %1604 = vmatprep.mubr.msk.f32.mxu0 %vm174_vm0, %v1239_v3 }
 0x479   :  { %1605 = vmatmul.mubr.msk.f32.vlgmr.msra.gmra.mrb[8].mxu0 %vm174_vm0, %v1246_v1 }
 0x54c   :  { %v1606_v5 = vpop.f32.mrb[8].mxu0 }
 0x54d   :  { %v1336_v6 = vadd.f32 %v1606_v5, %v1446_v4  ;;  %v1330_v7 = vpop.f32.mrb[9].mxu0 }
 0x54e   :  { %v1331_v8 = vadd.f32 %v1446_v4, %v1330_v7 }
 0x54f   :  { %v1340_v9 = vadd.f32 %v1336_v6, %v2162_v20 }
 0x550   :  { %v1339_v10 = vadd.f32 %v1331_v8, %v2158_v12 }
 0x551   :  { %v1344_v11 = vsel %vm174_vm0, %v1340_v9, 0.0 }
 0x552   :  { %1345 = vadd.xlane.f32.xlu1 %v1344_v11  ;;  %v1341_v13 = vsel %vm174_vm0, %v1339_v10, 0.0 }
 0x553   :  { %1342 = vadd.xlane.f32.xlu0 %v1341_v13 }
 0x5df   :  { %v1346_v14 = vpop.xlane.xlu1 %1345 }
 0x5e0   :  { %v1349_v15 = vmul.f32 0.03125, %v1346_v14  ;;  %v1343_v16 = vpop.xlane.xlu0 %1342 }
 0x5e1   :  { %v1348_v17 = vmul.f32 0.03125, %v1343_v16 }
 0x5e2   :  { %v1351_v18 = vsub.f32 %v1340_v9, %v1349_v15 }
 0x5e3   :  { %v1350_v19 = vsub.f32 %v1339_v10, %v1348_v17 }
 0x5e4   :  { %v1353_v21 = vmul.f32 %v1351_v18, %v1351_v18 }
 0x5e5   :  { %v1352_v22 = vmul.f32 %v1350_v19, %v1350_v19 }
 0x5e6   :  { %v1357_v23 = vsel %vm174_vm0, %v1353_v21, 0.0 }
 0x5e7   :  { %1358 = vadd.xlane.f32.xlu1 %v1357_v23  ;;  %v1354_v20 = vsel %vm174_vm0, %v1352_v22, 0.0 }
 0x5e8   :  { %1355 = vadd.xlane.f32.xlu0 %v1354_v20 }
 0x674   :  { %v1359_v12 = vpop.xlane.xlu1 %1358 }
 0x675   :  { %v1361_v24 = vmul.f32 0.03125, %v1359_v12  ;;  %v1356_v25 = vpop.xlane.xlu0 %1355 }
 0x676   :  { %v1360_v26 = vmul.f32 0.03125, %v1356_v25 }
 0x677   :  { %v1363_v27 = vadd.f32 1e-12, %v1361_v24 }
 0x678   :  { %v1362_v28 = vadd.f32 1e-12, %v1360_v26 }
 0x679   :  { %1722 = vrsqrt.f32 %v1363_v27 }
 0x67a   :  { %1724 = vrsqrt.f32 %v1362_v28 }
 0x683   :  { %v1723_v29 = vpop.eup %1722 }
 0x684   :  { %v1725_v31 = vpop.eup %1724  ;;  %v1367_v32 = vmul.f32 %v1723_v29, %v1351_v18 }
 0x685   :  { %v1366_v33 = vmul.f32 %v1725_v31, %v1350_v19 }
 0x686   :  { %v1376_v35 = vmul.f32 %v1449_v30, %v1367_v32 }
 0x687   :  { %v1375_v36 = vmul.f32 %v1449_v30, %v1366_v33 }
 0x688   :  { %v1385_v37 = vadd.f32 %v1450_v34, %v1376_v35 }
 0x689   :  { %v1384_v60 = vadd.f32 %v1450_v34, %v1375_v36 }
 0x68a   :  { %1387 = vst.msk [vmem:[#allocation16 + $0x8] sm:$0xff] %vm174_vm0, %v1385_v37 }
 0x68b   :  { %1386 = vst.msk [vmem:[#allocation16] sm:$0xff] %vm174_vm0, %v1384_v60 }
 0x68c   :  { %1913 = shalt.err (!%p1910_p12)
}
 0x68d   :  { %s1914_s29 = scalar_lea.hbm %s2318_s14, 256 }
 0x68e   :  { %p1915_p13 = scmp.ne.s32.totalorder %s2318_s14, %s1914_s29  ;;  %p1918_p0 = scmp.lt.u32.totalorder %s1914_s29, %s2318_s14 }
 0x690   :  { %p1920_p1 = pnand %p1918_p0, %p1915_p13 }
 0x692   :  { %1923 = shalt.err (!%p1920_p1)
}
 0x693   :  { %1399 = dma.vmem_to_hbm [thread:$0]  %s1394_s23, 256, %s2318_s14, [#allocation4], %s1938_s25, %s1938_s25, %s1939_s26  }
 0x694   :  { %1934 = dma.done.wait [#allocation4], 256  }
 0x695   :  { %1935 = vsyncadd [#allocation4], 4294967040 }
 0x696   :  { %1403 = vsyncpa [#allocation3], 1 }
 0x697   :  { %1404 = vsyncpa [#allocation6], 1 }
 0x698   :  { %1405 = vsyncpa [#allocation9], 1 }
 0x699   :  { %1406 = vsyncpa [#allocation12], 1 }
 0x69a   :  { %1407 = vsyncpa [#allocation15], 1 }
 0x69b   :  { %1408 = vsyncpa [#allocation4], 1 }

</bundles_post_ra>
